<compile_context>
chip_gen: v7x
topology: tpu7x:2x2x1
jax: 0.10.0
libtpu: 0.0.40
codegen_flags: <defaults>
</compile_context>

<pallas_src>
import jax
import jax.numpy as jnp
from jax.experimental import pallas as pl
from jax.experimental.pallas import tpu as pltpu


def _round_up(v, m):
    return ((v + m - 1) // m) * m


def _pad2(a, rows, cols):
    a = jnp.asarray(a, jnp.float32)
    return jnp.pad(a, ((0, rows - a.shape[0]), (0, cols - a.shape[1])))


def _nnc_dynamics_kernel(t_ref, x_ref, wt_ref, wx_ref, b1_ref,
                         w2b_ref, b2b_ref, a_ref, dx_ref, acc_ref):
    # grid = (j: output-column tiles of A/W2B/dx, k: reduction tiles over A rows)
    k = pl.program_id(1)
    tk = a_ref.shape[0]  # reduction tile size (static)

    @pl.when(k == 0)
    def _():
        # ---- controller: h = tanh(t * Wt + x @ Wx + b1)  (f32 math) ----
        # time term: [b,1] * [1,H] broadcast (cheaper than a degenerate K=1 matmul)
        h = jnp.tanh(
            t_ref[...] * wt_ref[...]
            + jnp.dot(x_ref[...], wx_ref[...],
                      preferred_element_type=jnp.float32)
            + b1_ref[...]
        )                                                     # [b, H] f32
        # ---- folded control path: u @ B == h @ (W2 @ B) + b2 @ B ----
        acc_ref[...] = (
            jnp.dot(h.astype(w2b_ref.dtype), w2b_ref[...],
                    preferred_element_type=jnp.float32)
            + b2b_ref[...]
        )                                                     # [b, tn] f32

    # ---- coupling term: accumulate x[:, k-tile] @ A[k-tile, j-tile] ----
    start = pl.multiple_of(k * tk, tk)
    x_k = x_ref[:, pl.ds(start, tk)]                          # [b, tk] bf16
    acc_ref[...] += jnp.dot(x_k, a_ref[...],
                            preferred_element_type=jnp.float32)

    @pl.when(k == pl.num_programs(1) - 1)
    def _():
        dx_ref[...] = acc_ref[...].astype(dx_ref.dtype)


def nnc_dynamics(t, x, params, *, max_tile=512):
    """
    t: [b, 1] (or [1] shared across batch), x: [b, m, n_nodes] with m == 1
    returns dx: [b, m, n_nodes]
    """
    b, m, n_nodes = x.shape
    assert m == 1, "this synthetic instantiation uses a single state variable"
    wt, wx, b1, w2, b2, a_mat, b_drv = (
        params["wt"], params["wx"], params["b1"],
        params["w2"], params["b2"], params["A"], params["B"],
    )
    hidden = wx.shape[1]

    # Fold the linear control path once per call (exact): W2B = W2 @ B, b2B = b2 @ B.
    w2b = jnp.asarray(w2, jnp.float32) @ jnp.asarray(b_drv, jnp.float32)   # [H, N]
    b2b = jnp.asarray(b2, jnp.float32) @ jnp.asarray(b_drv, jnp.float32)   # [1, N]

    # Padded / tiled shapes: lanes multiple of 128, sublanes multiple of 8.
    n0 = _round_up(n_nodes, 128)
    tile = min(max_tile, n0)                 # square A tile (multiple of 128)
    n_pad = _round_up(n_nodes, tile)
    h_pad = _round_up(hidden, 128)
    b_pad = _round_up(b, 8)

    t2 = jnp.broadcast_to(jnp.asarray(t, jnp.float32).reshape(-1, 1), (b, 1))
    t2 = jnp.pad(t2, ((0, b_pad - b), (0, 0)))

    # bf16 matmul operands (f32 accumulation inside the kernel); biases stay f32.
    x2 = _pad2(x.reshape(b, n_nodes), b_pad, n_pad).astype(jnp.bfloat16)
    wt_p = _pad2(wt, 1, h_pad)
    wx_p = _pad2(wx, n_pad, h_pad).astype(jnp.bfloat16)
    b1_p = _pad2(b1, 1, h_pad)
    w2b_p = _pad2(w2b, h_pad, n_pad).astype(jnp.bfloat16)
    b2b_p = _pad2(b2b, 1, n_pad)
    a_p = _pad2(a_mat, n_pad, n_pad).astype(jnp.bfloat16)

    grid = (n_pad // tile, n_pad // tile)    # (output-col tiles, reduction tiles)

    dx2 = pl.pallas_call(
        _nnc_dynamics_kernel,
        out_shape=jax.ShapeDtypeStruct((b_pad, n_pad), jnp.float32),
        grid_spec=pltpu.PrefetchScalarGridSpec(
            num_scalar_prefetch=0,
            grid=grid,
            in_specs=[
                pl.BlockSpec((b_pad, 1), lambda j, k: (0, 0)),       # t
                pl.BlockSpec((b_pad, n_pad), lambda j, k: (0, 0)),   # x (resident)
                pl.BlockSpec((1, h_pad), lambda j, k: (0, 0)),       # Wt
                pl.BlockSpec((n_pad, h_pad), lambda j, k: (0, 0)),   # Wx (resident)
                pl.BlockSpec((1, h_pad), lambda j, k: (0, 0)),       # b1
                pl.BlockSpec((h_pad, tile), lambda j, k: (0, j)),    # W2B (col tile)
                pl.BlockSpec((1, tile), lambda j, k: (0, j)),        # b2B (col tile)
                pl.BlockSpec((tile, tile), lambda j, k: (k, j)),     # A tile
            ],
            out_specs=pl.BlockSpec((b_pad, tile), lambda j, k: (0, j)),
            scratch_shapes=[pltpu.VMEM((b_pad, tile), jnp.float32)],
        ),
        compiler_params=pltpu.CompilerParams(
            dimension_semantics=("parallel", "arbitrary"),
            vmem_limit_bytes=64 * 1024 * 1024,
        ),
    )(t2, x2, wt_p, wx_p, b1_p, w2b_p, b2b_p, a_p)

    return dx2[:b, :n_nodes].reshape(b, m, n_nodes)


def init_params(key, n_nodes, hidden, n_drivers):
    ks = jax.random.split(key, 7)
    scale = 0.1
    return {
        "wt": scale * jax.random.normal(ks[0], (1, hidden), jnp.float32),
        "wx": scale * jax.random.normal(ks[1], (n_nodes, hidden), jnp.float32),
        "b1": scale * jax.random.normal(ks[2], (1, hidden), jnp.float32),
        "w2": scale * jax.random.normal(ks[3], (hidden, n_drivers), jnp.float32),
        "b2": scale * jax.random.normal(ks[4], (1, n_drivers), jnp.float32),
        "A":  scale * jax.random.normal(ks[5], (n_nodes, n_nodes), jnp.float32),
        "B":  scale * jax.random.normal(ks[6], (n_drivers, n_nodes), jnp.float32),
    }


if __name__ == "__main__":
    key = jax.random.PRNGKey(0)
    b, m, n_nodes, hidden, n_drivers = 2, 1, 16, 32, 4

    k_t, k_x, k_p = jax.random.split(key, 3)
    params = init_params(k_p, n_nodes, hidden, n_drivers)
    t = jax.random.uniform(k_t, (b, 1), jnp.float32)
    x = jax.random.normal(k_x, (b, m, n_nodes), jnp.float32)

    dx = nnc_dynamics(t, x, params)
    dx = jax.block_until_ready(dx)

    # pure-JAX f32 reference (kernel uses bf16 matmul operands + f32 accumulation,
    # so tolerance is relaxed vs. the old pure-f32 path)
    t2 = t.reshape(b, 1)
    x2 = x.reshape(b, n_nodes)
    h_ref = jnp.tanh(t2 * params["wt"] + x2 @ params["wx"] + params["b1"])
    u_ref = h_ref @ params["w2"] + params["b2"]
    dx_ref = (x2 @ params["A"] + u_ref @ params["B"]).reshape(b, m, n_nodes)

    assert dx.shape == (b, m, n_nodes)
    assert jnp.allclose(dx, dx_ref, atol=2e-2, rtol=2e-2), (
        f"max abs err = {jnp.max(jnp.abs(dx - dx_ref))}")

    print("KERNEL_OK")
</pallas_src>

<mosaic_0001>
module attributes {stable_mosaic.version = 11 : i64} {
  func.func @_nnc_dynamics_kernel(%arg0: i32, %arg1: i32, %arg2: memref<8x1xf32, #tpu.memory_space<vmem>>, %arg3: memref<8x128xbf16, #tpu.memory_space<vmem>>, %arg4: memref<1x128xf32, #tpu.memory_space<vmem>>, %arg5: memref<128x128xbf16, #tpu.memory_space<vmem>>, %arg6: memref<1x128xf32, #tpu.memory_space<vmem>>, %arg7: memref<128x128xbf16, #tpu.memory_space<vmem>>, %arg8: memref<1x128xf32, #tpu.memory_space<vmem>>, %arg9: memref<128x128xbf16, #tpu.memory_space<vmem>>, %arg10: memref<8x128xf32, #tpu.memory_space<vmem>>, %arg11: memref<8x128xf32, #tpu.memory_space<vmem>>) attributes {dimension_semantics = [#tpu.dimension_semantics<parallel>, #tpu.dimension_semantics<arbitrary>], iteration_bounds = array<i64: 1, 1>, scalar_prefetch = 0 : i64, scratch_operands = 1 : i64, tpu.core_type = #tpu.core_type<tc>, window_params = [{pipeline_mode = #tpu.pipeline_mode<synchronous>, transform_indices = @transform_0, window_bounds = array<i64: 8, 1>}, {pipeline_mode = #tpu.pipeline_mode<synchronous>, transform_indices = @transform_1, window_bounds = array<i64: 8, 128>}, {pipeline_mode = #tpu.pipeline_mode<synchronous>, transform_indices = @transform_2, window_bounds = array<i64: 1, 128>}, {pipeline_mode = #tpu.pipeline_mode<synchronous>, transform_indices = @transform_3, window_bounds = array<i64: 128, 128>}, {pipeline_mode = #tpu.pipeline_mode<synchronous>, transform_indices = @transform_4, window_bounds = array<i64: 1, 128>}, {transform_indices = @transform_5, window_bounds = array<i64: 128, 128>}, {transform_indices = @transform_6, window_bounds = array<i64: 1, 128>}, {transform_indices = @transform_7, window_bounds = array<i64: 128, 128>}, {transform_indices = @transform_8, window_bounds = array<i64: 8, 128>}]} {
    %c0_i32 = arith.constant 0 : i32
    %0 = arith.cmpi eq, %arg1, %c0_i32 : i32
    %1 = arith.extui %0 : i1 to i32
    %c0_i32_0 = arith.constant 0 : i32
    %2 = arith.cmpi ne, %1, %c0_i32_0 : i32
    scf.if %2 {
      %c0_9 = arith.constant 0 : index
      %c0_10 = arith.constant 0 : index
      %15 = vector.load %arg2[%c0_9, %c0_10] : memref<8x1xf32, #tpu.memory_space<vmem>>, vector<8x1xf32>
      %c0_11 = arith.constant 0 : index
      %c0_12 = arith.constant 0 : index
      %16 = vector.load %arg4[%c0_11, %c0_12] : memref<1x128xf32, #tpu.memory_space<vmem>>, vector<1x128xf32>
      %17 = vector.broadcast %15 : vector<8x1xf32> to vector<8x128xf32>
      %18 = vector.broadcast %16 : vector<1x128xf32> to vector<8x128xf32>
      %19 = arith.mulf %17, %18 : vector<8x128xf32>
      %c0_13 = arith.constant 0 : index
      %c0_14 = arith.constant 0 : index
      %20 = vector.load %arg3[%c0_13, %c0_14] : memref<8x128xbf16, #tpu.memory_space<vmem>>, vector<8x128xbf16>
      %c0_15 = arith.constant 0 : index
      %c0_16 = arith.constant 0 : index
      %21 = vector.load %arg5[%c0_15, %c0_16] : memref<128x128xbf16, #tpu.memory_space<vmem>>, vector<128x128xbf16>
      %cst_17 = arith.constant dense<0.000000e+00> : vector<8x128xf32>
      %22 = tpu.matmul %20, %21, %cst_17 {dimension_numbers = #tpu.dot_dimension_numbers<[1], [0], [0], [1], [0, 0, 1, 1], [], []>} : vector<8x128xbf16>, vector<128x128xbf16>, vector<8x128xf32> -> vector<8x128xf32>
      %23 = arith.addf %19, %22 : vector<8x128xf32>
      %c0_18 = arith.constant 0 : index
      %c0_19 = arith.constant 0 : index
      %24 = vector.load %arg6[%c0_18, %c0_19] : memref<1x128xf32, #tpu.memory_space<vmem>>, vector<1x128xf32>
      %25 = vector.broadcast %24 : vector<1x128xf32> to vector<8x128xf32>
      %26 = arith.addf %23, %25 : vector<8x128xf32>
      %27 = math.tanh %26 : vector<8x128xf32>
      %28 = arith.truncf %27 : vector<8x128xf32> to vector<8x128xbf16>
      %c0_20 = arith.constant 0 : index
      %c0_21 = arith.constant 0 : index
      %29 = vector.load %arg7[%c0_20, %c0_21] : memref<128x128xbf16, #tpu.memory_space<vmem>>, vector<128x128xbf16>
      %cst_22 = arith.constant dense<0.000000e+00> : vector<8x128xf32>
      %30 = tpu.matmul %28, %29, %cst_22 {dimension_numbers = #tpu.dot_dimension_numbers<[1], [0], [0], [1], [0, 0, 1, 1], [], []>} : vector<8x128xbf16>, vector<128x128xbf16>, vector<8x128xf32> -> vector<8x128xf32>
      %c0_23 = arith.constant 0 : index
      %c0_24 = arith.constant 0 : index
      %31 = vector.load %arg8[%c0_23, %c0_24] : memref<1x128xf32, #tpu.memory_space<vmem>>, vector<1x128xf32>
      %32 = vector.broadcast %31 : vector<1x128xf32> to vector<8x128xf32>
      %33 = arith.addf %30, %32 : vector<8x128xf32>
      %c0_25 = arith.constant 0 : index
      %c0_26 = arith.constant 0 : index
      %34 = vector.load %arg11[%c0_25, %c0_26] : memref<8x128xf32, #tpu.memory_space<vmem>>, vector<8x128xf32>
      tpu.vector_store %arg11[%c0_25, %c0_26], %33 {strides = array<i32>} : memref<8x128xf32, #tpu.memory_space<vmem>>, vector<8x128xf32>,
    } else {
    }
    %c128_i32 = arith.constant 128 : i32
    %3 = arith.muli %arg1, %c128_i32 : i32
    %4 = tpu.assume_multiple %3, 128 : i32
    %c0 = arith.constant 0 : index
    %5 = arith.index_cast %4 : i32 to index
    %6 = vector.load %arg3[%c0, %5] : memref<8x128xbf16, #tpu.memory_space<vmem>>, vector<8x128xbf16>
    %c0_1 = arith.constant 0 : index
    %c0_2 = arith.constant 0 : index
    %7 = vector.load %arg11[%c0_1, %c0_2] : memref<8x128xf32, #tpu.memory_space<vmem>>, vector<8x128xf32>
    %c0_3 = arith.constant 0 : index
    %c0_4 = arith.constant 0 : index
    %8 = vector.load %arg9[%c0_3, %c0_4] : memref<128x128xbf16, #tpu.memory_space<vmem>>, vector<128x128xbf16>
    %cst = arith.constant dense<0.000000e+00> : vector<8x128xf32>
    %9 = tpu.matmul %6, %8, %cst {dimension_numbers = #tpu.dot_dimension_numbers<[1], [0], [0], [1], [0, 0, 1, 1], [], []>} : vector<8x128xbf16>, vector<128x128xbf16>, vector<8x128xf32> -> vector<8x128xf32>
    %10 = arith.addf %7, %9 : vector<8x128xf32>
    %c0_5 = arith.constant 0 : index
    %c0_6 = arith.constant 0 : index
    %11 = vector.load %arg11[%c0_5, %c0_6] : memref<8x128xf32, #tpu.memory_space<vmem>>, vector<8x128xf32>
    tpu.vector_store %arg11[%c0_5, %c0_6], %10 {strides = array<i32>} : memref<8x128xf32, #tpu.memory_space<vmem>>, vector<8x128xf32>,
    %c0_i32_7 = arith.constant 0 : i32
    %12 = arith.cmpi eq, %arg1, %c0_i32_7 : i32
    %13 = arith.extui %12 : i1 to i32
    %c0_i32_8 = arith.constant 0 : i32
    %14 = arith.cmpi ne, %13, %c0_i32_8 : i32
    scf.if %14 {
      %c0_9 = arith.constant 0 : index
      %c0_10 = arith.constant 0 : index
      %15 = vector.load %arg11[%c0_9, %c0_10] : memref<8x128xf32, #tpu.memory_space<vmem>>, vector<8x128xf32>
      %c0_11 = arith.constant 0 : index
      %c0_12 = arith.constant 0 : index
      %16 = vector.load %arg10[%c0_11, %c0_12] : memref<8x128xf32, #tpu.memory_space<vmem>>, vector<8x128xf32>
      tpu.vector_store %arg10[%c0_11, %c0_12], %15 {strides = array<i32>} : memref<8x128xf32, #tpu.memory_space<vmem>>, vector<8x128xf32>,
    } else {
    }
    return
  }
  func.func @transform_0(%arg0: i32, %arg1: i32) -> (i32, i32) {
    %c0_i32 = arith.constant 0 : i32
    %c0_i32_0 = arith.constant 0 : i32
    %c0_i32_1 = arith.constant 0 : i32
    return %c0_i32, %c0_i32_0 : i32, i32
  }
  func.func @transform_1(%arg0: i32, %arg1: i32) -> (i32, i32) {
    %c0_i32 = arith.constant 0 : i32
    %c0_i32_0 = arith.constant 0 : i32
    %c0_i32_1 = arith.constant 0 : i32
    return %c0_i32, %c0_i32_0 : i32, i32
  }
  func.func @transform_2(%arg0: i32, %arg1: i32) -> (i32, i32) {
    %c0_i32 = arith.constant 0 : i32
    %c0_i32_0 = arith.constant 0 : i32
    %c0_i32_1 = arith.constant 0 : i32
    return %c0_i32, %c0_i32_0 : i32, i32
  }
  func.func @transform_3(%arg0: i32, %arg1: i32) -> (i32, i32) {
    %c0_i32 = arith.constant 0 : i32
    %c0_i32_0 = arith.constant 0 : i32
    %c0_i32_1 = arith.constant 0 : i32
    return %c0_i32, %c0_i32_0 : i32, i32
  }
  func.func @transform_4(%arg0: i32, %arg1: i32) -> (i32, i32) {
    %c0_i32 = arith.constant 0 : i32
    %c0_i32_0 = arith.constant 0 : i32
    %c0_i32_1 = arith.constant 0 : i32
    return %c0_i32, %c0_i32_0 : i32, i32
  }
  func.func @transform_5(%arg0: i32, %arg1: i32) -> (i32, i32) {
    %c0_i32 = arith.constant 0 : i32
    %c0_i32_0 = arith.constant 0 : i32
    return %c0_i32, %arg0 : i32, i32
  }
  func.func @transform_6(%arg0: i32, %arg1: i32) -> (i32, i32) {
    %c0_i32 = arith.constant 0 : i32
    %c0_i32_0 = arith.constant 0 : i32
    return %c0_i32, %arg0 : i32, i32
  }
  func.func @transform_7(%arg0: i32, %arg1: i32) -> (i32, i32) {
    %c0_i32 = arith.constant 0 : i32
    return %arg1, %arg0 : i32, i32
  }
  func.func @transform_8(%arg0: i32, %arg1: i32) -> (i32, i32) {
    %c0_i32 = arith.constant 0 : i32
    %c0_i32_0 = arith.constant 0 : i32
    return %c0_i32, %arg0 : i32, i32
  }
}

</mosaic_0001>

<bundles_post_ra>
// kernel: tpu_custom_call.1
= control target key start
LH: loop header
LB: loop body
LE: loop exit
PB: predicated region body
PF: predicated region fallthrough
CT: control target
= control target key end

     0   :  { %13 = vsyncpa [#allocation4], 0  ;;  %s1105_s0 = inlined_call_operand.hbm [shape: f32[8,1], index: 0, kind: input, shape index: {}]   ;;  %s1106_s1 = inlined_call_operand.hbm [shape: bf16[8,128], index: 1, kind: input, shape index: {}]   ;;  %s1107_s2 = inlined_call_operand.hbm [shape: f32[1,128], index: 2, kind: input, shape index: {}]   ;;  %s1108_s3 = inlined_call_operand.hbm [shape: bf16[128,128], index: 3, kind: input, shape index: {}]   ;;  %s1109_s4 = inlined_call_operand.hbm [shape: f32[1,128], index: 4, kind: input, shape index: {}]   ;;  %s1110_s5 = inlined_call_operand.hbm [shape: bf16[128,128], index: 5, kind: input, shape index: {}]   ;;  %s1111_s6 = inlined_call_operand.hbm [shape: f32[1,128], index: 6, kind: input, shape index: {}]   ;;  %s1112_s7 = inlined_call_operand.hbm [shape: bf16[128,128], index: 7, kind: input, shape index: {}]   ;;  %s1113_s8 = inlined_call_operand.hbm [shape: f32[8,128], index: 8, kind: output, shape index: {}]  }
   0x1   :  { %14 = vsyncpa [#allocation7], 0 }
   0x2   :  { %15 = vsyncpa [#allocation10], 0 }
   0x3   :  { %16 = vsyncpa [#allocation13], 0 }
   0x4   :  { %17 = vsyncpa [#allocation16], 0 }
   0x5   :  { %18 = vsyncpa [#allocation5], 0  ;;  %s885_s27 = smov [#allocation6]   ;;  %s886_s29 = smov [#allocation9]  }
   0x6   :  { %s35_s28 = sshll.u32 %s885_s27, 4  ;;  %s54_s30 = sshll.u32 %s886_s29, 4  ;;  %s36_s28 = int_to_ptr.vmem [resolvable:$true] %s35_s28  ;;  %s944_s30 = int_to_ptr.vmem [resolvable:$true] %s54_s30 }
   0x7   :  { %s675_s11 = scalar_lea.hbm %s1106_s1, 64 }
   0x8   :  { %p676_p0 = scmp.ne.s32.totalorder %s1106_s1, %s675_s11  ;;  %p679_p1 = scmp.lt.u32.totalorder %s675_s11, %s1106_s1 }
   0xa   :  { %p681_p2 = pnand %p679_p1, %p676_p0 }
   0xc   :  { %684 = shalt.err (!%p681_p2)
}
   0xd   :  { %s685_s16 = scalar_lea.vmem %s36_s28, 64  ;;  %p690_p4 = scmp.lt.s32.totalorder %s36_s28, %s36_s28 }
   0xe   :  { %p686_p3 = scmp.ne.s32.totalorder %s36_s28, %s685_s16  ;;  %p691_p5 = scmp.lt.s32.totalorder %s685_s16, %s685_s16 }
  0x10   :  { %p692_p6 = por %p691_p5, %p690_p4 }
  0x12   :  { %p693_p7 = pnand %p692_p6, %p686_p3 }
  0x14   :  { %696 = shalt.err (!%p693_p7)
}
  0x15   :  { %38 = dma.hbm_to_vmem [thread:$0]  %s1106_s1, 64, %s36_s28, [#allocation7]  }
  0x16   :  { %s697_s21 = scalar_lea.hbm %s1108_s3, 1024 }
  0x17   :  { %p698_p8 = scmp.ne.s32.totalorder %s1108_s3, %s697_s21  ;;  %p701_p9 = scmp.lt.u32.totalorder %s697_s21, %s1108_s3 }
  0x19   :  { %p703_p10 = pnand %p701_p9, %p698_p8 }
  0x1b   :  { %706 = shalt.err (!%p703_p10)
}
  0x1c   :  { %s707_s26 = scalar_lea.vmem %s944_s30, 1024  ;;  %p712_p12 = scmp.lt.s32.totalorder %s944_s30, %s944_s30 }
  0x1d   :  { %p708_p11 = scmp.ne.s32.totalorder %s944_s30, %s707_s26  ;;  %p713_p13 = scmp.lt.s32.totalorder %s707_s26, %s707_s26 }
  0x1f   :  { %p714_p0 = por %p713_p13, %p712_p12 }
  0x21   :  { %p715_p1 = pnand %p714_p0, %p708_p11 }
  0x23   :  { %718 = shalt.err (!%p715_p1)
}
  0x24   :  { %s887_s1 = smov 64   ;;  %s888_s27 = smov 4  }
  0x25   :  { %60 = dma.hbm_to_vmem [thread:$0]  %s1108_s3, 1024, %s944_s30, [#allocation10], %s887_s1, %s887_s1, %s888_s27  }
  0x26   :  { %s889_s9 = smov [#allocation12]   ;;  %s890_s11 = smov [#allocation3]  }
  0x27   :  { %s76_s10 = sshll.u32 %s889_s9, 4  ;;  %s25_s12 = sshll.u32 %s890_s11, 4  ;;  %s77_s10 = int_to_ptr.vmem [resolvable:$true] %s76_s10  ;;  %s26_s12 = int_to_ptr.vmem [resolvable:$true] %s25_s12 }
  0x28   :  { %s719_s15 = scalar_lea.hbm %s1110_s5, 1024 }
  0x29   :  { %p720_p2 = scmp.ne.s32.totalorder %s1110_s5, %s719_s15  ;;  %p723_p3 = scmp.lt.u32.totalorder %s719_s15, %s1110_s5 }
  0x2b   :  { %p725_p4 = pnand %p723_p3, %p720_p2 }
  0x2d   :  { %728 = shalt.err (!%p725_p4)
}
  0x2e   :  { %s729_s3 = scalar_lea.vmem %s77_s10, 1024  ;;  %p734_p6 = scmp.lt.s32.totalorder %s77_s10, %s77_s10 }
  0x2f   :  { %p730_p5 = scmp.ne.s32.totalorder %s77_s10, %s729_s3  ;;  %p735_p7 = scmp.lt.s32.totalorder %s729_s3, %s729_s3 }
  0x31   :  { %p736_p8 = por %p735_p7, %p734_p6 }
  0x33   :  { %p737_p9 = pnand %p736_p8, %p730_p5 }
  0x35   :  { %740 = shalt.err (!%p737_p9)
}
  0x36   :  { %82 = dma.hbm_to_vmem [thread:$0]  %s1110_s5, 1024, %s77_s10, [#allocation13], %s887_s1, %s887_s1, %s888_s27  }
  0x37   :  { %s741_s23 = scalar_lea.hbm %s1105_s0, 128 }
  0x38   :  { %p742_p10 = scmp.ne.s32.totalorder %s1105_s0, %s741_s23  ;;  %p745_p11 = scmp.lt.u32.totalorder %s741_s23, %s1105_s0 }
  0x3a   :  { %p747_p12 = pnand %p745_p11, %p742_p10 }
  0x3c   :  { %750 = shalt.err (!%p747_p12)
}
  0x3d   :  { %s751_s29 = scalar_lea.vmem %s26_s12, 128  ;;  %p756_p0 = scmp.lt.s32.totalorder %s26_s12, %s26_s12 }
  0x3e   :  { %p752_p13 = scmp.ne.s32.totalorder %s26_s12, %s751_s29  ;;  %p757_p1 = scmp.lt.s32.totalorder %s751_s29, %s751_s29 }
  0x40   :  { %p758_p2 = por %p757_p1, %p756_p0 }
  0x42   :  { %p759_p3 = pnand %p758_p2, %p752_p13 }
  0x44   :  { %762 = shalt.err (!%p759_p3)
}
  0x45   :  { %28 = dma.hbm_to_vmem [thread:$0]  %s1105_s0, 128, %s26_s12, [#allocation4]  }
  0x46   :  { %s891_s10 = smov [#allocation8]   ;;  %s892_s13 = smov [#allocation11]  }
  0x47   :  { %s45_s11 = sshll.u32 %s891_s10, 4  ;;  %s67_s14 = sshll.u32 %s892_s13, 4  ;;  %s46_s11 = int_to_ptr.vmem [resolvable:$true] %s45_s11  ;;  %s68_s14 = int_to_ptr.vmem [resolvable:$true] %s67_s14 }
  0x48   :  { %s763_s17 = scalar_lea.hbm %s1107_s2, 16 }
  0x49   :  { %p764_p4 = scmp.ne.s32.totalorder %s1107_s2, %s763_s17  ;;  %p767_p5 = scmp.lt.u32.totalorder %s763_s17, %s1107_s2 }
  0x4b   :  { %p769_p6 = pnand %p767_p5, %p764_p4 }
  0x4d   :  { %772 = shalt.err (!%p769_p6)
}
  0x4e   :  { %s773_s0 = scalar_lea.vmem %s46_s11, 16  ;;  %s777_s12 = scalar_lea.vmem %s46_s11, 32 }
  0x4f   :  { %p774_p7 = scmp.ne.s32.totalorder %s46_s11, %s773_s0  ;;  %p778_p8 = scmp.lt.s32.totalorder %s46_s11, %s46_s11 }
  0x50   :  { %p779_p9 = scmp.lt.s32.totalorder %s777_s12, %s773_s0 }
  0x52   :  { %p780_p10 = por %p779_p9, %p778_p8 }
  0x54   :  { %p781_p11 = pnand %p780_p10, %p774_p7 }
  0x56   :  { %784 = shalt.err (!%p781_p11)
}
  0x57   :  { %48 = dma.hbm_to_vmem [thread:$0]  %s1107_s2, 16, %s46_s11, [#allocation7]  }
  0x58   :  { %s785_s24 = scalar_lea.hbm %s1109_s4, 16 }
  0x59   :  { %p786_p12 = scmp.ne.s32.totalorder %s1109_s4, %s785_s24  ;;  %p789_p13 = scmp.lt.u32.totalorder %s785_s24, %s1109_s4 }
  0x5b   :  { %p791_p0 = pnand %p789_p13, %p786_p12 }
  0x5d   :  { %794 = shalt.err (!%p791_p0)
}
  0x5e   :  { %s795_s5 = scalar_lea.vmem %s68_s14, 16  ;;  %s799_s9 = scalar_lea.vmem %s68_s14, 32 }
  0x5f   :  { %p796_p1 = scmp.ne.s32.totalorder %s68_s14, %s795_s5  ;;  %p800_p2 = scmp.lt.s32.totalorder %s68_s14, %s68_s14 }
  0x60   :  { %p801_p3 = scmp.lt.s32.totalorder %s799_s9, %s795_s5 }
  0x62   :  { %p802_p4 = por %p801_p3, %p800_p2 }
  0x64   :  { %p803_p5 = pnand %p802_p4, %p796_p1 }
  0x66   :  { %806 = shalt.err (!%p803_p5)
}
  0x67   :  { %70 = dma.hbm_to_vmem [thread:$0]  %s1109_s4, 16, %s68_s14, [#allocation10]  }
  0x68   :  { %s893_s11 = smov [#allocation14]   ;;  %s894_s15 = smov [#allocation15]  }
  0x69   :  { %s89_s13 = sshll.u32 %s893_s11, 4  ;;  %s98_s16 = sshll.u32 %s894_s15, 4  ;;  %s90_s13 = int_to_ptr.vmem [resolvable:$true] %s89_s13  ;;  %s1029_s16 = int_to_ptr.vmem [resolvable:$true] %s98_s16 }
  0x6a   :  { %s807_s19 = scalar_lea.hbm %s1111_s6, 16 }
  0x6b   :  { %p808_p6 = scmp.ne.s32.totalorder %s1111_s6, %s807_s19  ;;  %p811_p7 = scmp.lt.u32.totalorder %s807_s19, %s1111_s6 }
  0x6d   :  { %p813_p8 = pnand %p811_p7, %p808_p6 }
  0x6f   :  { %816 = shalt.err (!%p813_p8)
}
  0x70   :  { %s817_s4 = scalar_lea.vmem %s90_s13, 16  ;;  %s821_s14 = scalar_lea.vmem %s90_s13, 32 }
  0x71   :  { %p818_p9 = scmp.ne.s32.totalorder %s90_s13, %s817_s4  ;;  %p822_p10 = scmp.lt.s32.totalorder %s90_s13, %s90_s13 }
  0x72   :  { %p823_p11 = scmp.lt.s32.totalorder %s821_s14, %s817_s4 }
  0x74   :  { %p824_p12 = por %p823_p11, %p822_p10 }
  0x76   :  { %p825_p13 = pnand %p824_p12, %p818_p9 }
  0x78   :  { %828 = shalt.err (!%p825_p13)
}
  0x79   :  { %92 = dma.hbm_to_vmem [thread:$0]  %s1111_s6, 16, %s90_s13, [#allocation13]  }
  0x7a   :  { %s829_s24 = scalar_lea.hbm %s1112_s7, 1024 }
  0x7b   :  { %p830_p0 = scmp.ne.s32.totalorder %s1112_s7, %s829_s24  ;;  %p833_p1 = scmp.lt.u32.totalorder %s829_s24, %s1112_s7 }
  0x7d   :  { %p835_p2 = pnand %p833_p1, %p830_p0 }
  0x7f   :  { %838 = shalt.err (!%p835_p2)
}
  0x80   :  { %s839_s5 = scalar_lea.vmem %s1029_s16, 1024  ;;  %p844_p4 = scmp.lt.s32.totalorder %s1029_s16, %s1029_s16 }
  0x81   :  { %p840_p3 = scmp.ne.s32.totalorder %s1029_s16, %s839_s5  ;;  %p845_p5 = scmp.lt.s32.totalorder %s839_s5, %s839_s5 }
  0x83   :  { %p846_p6 = por %p845_p5, %p844_p4 }
  0x85   :  { %p847_p7 = pnand %p846_p6, %p840_p3 }
  0x87   :  { %850 = shalt.err (!%p847_p7)
}
  0x88   :  { %104 = dma.hbm_to_vmem [thread:$0]  %s1112_s7, 1024, %s1029_s16, [#allocation16], %s887_s1, %s887_s1, %s888_s27  }
  0x89   :  { %873 = dma.done.wait [#allocation4], 128  }
  0x8a   :  { %874 = vsyncadd [#allocation4], 4294967168 }
  0x8b   :  { %875 = dma.done.wait [#allocation7], 80  }
  0x8c   :  { %876 = vsyncadd [#allocation7], 4294967216 }
  0x8d   :  { %877 = dma.done.wait [#allocation10], 1040  }
  0x8e   :  { %878 = vsyncadd [#allocation10], 4294966256 }
  0x8f   :  { %879 = dma.done.wait [#allocation13], 1040  }
  0x90   :  { %880 = vsyncadd [#allocation13], 4294966256 }
  0x91   :  { %881 = dma.done.wait [#allocation16], 1024  }
  0x92   :  { %882 = vsyncadd [#allocation16], 4294966272  ;;  %v895_v0 = vmov 0.0   ;;  %vm896_vm0 = vmmov 0   ;;  %v897_v1 = vmov 0   ;;  %v649_v2 = vld [vmem:[#allocation9] sm:$0xff]  }
  0x93   :  { %569 = vmatprep.subr.bf16.mxu0 %v895_v0  ;;  %585 = vmatprep.mubr.msk.bf16.mxu0 %vm896_vm0, %v895_v0  ;;  %v650_v3 = vld [vmem:[#allocation9 + $0x8] sm:$0xff]   ;;  %v651_v4 = vld [vmem:[#allocation9 + $0x10] sm:$0xff]   ;;  %v652_v7 = vld [vmem:[#allocation9 + $0x18] sm:$0xff]   ;;  %s898_s7 = smov [#allocation17]  }
  0x94   :  { %648 = vset.pattern.permute.xlu0 %v897_v1  ;;  %589 = vmatprep.subr.bf16.mxu1 %v895_v0  ;;  %v134_v5 = vld [vmem:[#allocation3] sm:$0xff]  ;;  %v657_v6 = vld [vmem:[#allocation12] sm:$0xff]   ;;  %v658_v8 = vld [vmem:[#allocation12 + $0x8] sm:$0xff]   ;;  %s500_s1 = sshll.u32 %s898_s7, 4  ;;  %s501_s1 = int_to_ptr.vmem [resolvable:$true] %s500_s1 }
  0x95   :  { %605 = vmatprep.mubr.msk.bf16.mxu1 %vm896_vm0, %v895_v0  ;;  %570 = vmatpush3.bf16.msra.mxu0 %v649_v2  ;;  %v653_v9 = vld [vmem:[#allocation9 + $0x20] sm:$0xff]   ;;  %v659_v10 = vld [vmem:[#allocation12 + $0x10] sm:$0xff]   ;;  %v654_v11 = vld [vmem:[#allocation9 + $0x28] sm:$0xff]   ;;  %s851_s27 = scalar_lea.vmem %s501_s1, 128  ;;  %p856_p9 = scmp.lt.s32.totalorder %s501_s1, %s501_s1 }
  0x96   :  { %571 = vmatprep.subr.bf16.mxu0 %v895_v0  ;;  %138 = vperm.xlu0 %648, %v134_v5   ;;  %v660_v12 = vld [vmem:[#allocation12 + $0x18] sm:$0xff]   ;;  %v655_v13 = vld [vmem:[#allocation9 + $0x30] sm:$0xff]   ;;  %v661_v16 = vld [vmem:[#allocation12 + $0x20] sm:$0xff]   ;;  %p852_p8 = scmp.ne.s32.totalorder %s501_s1, %s851_s27  ;;  %p857_p10 = scmp.lt.s32.totalorder %s851_s27, %s851_s27 }
  0x97   :  { %590 = vmatpush3.bf16.msra.mxu1 %v657_v6  ;;  %v656_v14 = vld [vmem:[#allocation9 + $0x38] sm:$0xff]   ;;  %v662_v17 = vld [vmem:[#allocation12 + $0x28] sm:$0xff]   ;;  %v524_v24 = vld [vmem:[#allocation11] ss:$0 sm:$0xff] }
  0x98   :  { %591 = vmatprep.subr.bf16.mxu1 %v895_v0  ;;  %v148_v15 = vld [vmem:[#allocation6] sm:$0xf]  ;;  %v663_v18 = vld [vmem:[#allocation12 + $0x30] sm:$0xff]   ;;  %v515_v20 = vld [vmem:[#allocation8] ss:$0 sm:$0xff]  ;;  %p858_p11 = por %p857_p10, %p856_p9 }
  0x99   :  { %572 = vmatpush3.bf16.msra.mxu0 %v650_v3  ;;  %v664_v19 = vld [vmem:[#allocation12 + $0x38] sm:$0xff]   ;;  %v665_v31 = vld [vmem:[#allocation15] sm:$0xff]   ;;  %v666_v33 = vld [vmem:[#allocation15 + $0x8] sm:$0xff]  }
  0x9a   :  { %573 = vmatprep.subr.bf16.mxu0 %v895_v0  ;;  %v667_v34 = vld [vmem:[#allocation15 + $0x10] sm:$0xff]   ;;  %v668_v35 = vld [vmem:[#allocation15 + $0x18] sm:$0xff]   ;;  %v669_v36 = vld [vmem:[#allocation15 + $0x20] sm:$0xff]   ;;  %p859_p12 = pnand %p858_p11, %p852_p8 }
  0x9b   :  { %592 = vmatpush3.bf16.msra.mxu1 %v658_v8  ;;  %v670_v37 = vld [vmem:[#allocation15 + $0x28] sm:$0xff]   ;;  %v671_v38 = vld [vmem:[#allocation15 + $0x30] sm:$0xff]   ;;  %v672_v39 = vld [vmem:[#allocation15 + $0x38] sm:$0xff]  }
  0x9c   :  { %593 = vmatprep.subr.bf16.mxu1 %v895_v0  ;;  %v381_v40 = vld [vmem:[#allocation6] sm:$0xf]  ;;  %v525_v41 = vld [vmem:[#allocation14] ss:$0 sm:$0xff] }
  0x9d   :  { %574 = vmatpush3.bf16.msra.mxu0 %v651_v4 }
  0x9e   :  { %575 = vmatprep.subr.bf16.mxu0 %v895_v0 }
  0x9f   :  { %594 = vmatpush3.bf16.msra.mxu1 %v659_v10 }
  0xa0   :  { %595 = vmatprep.subr.bf16.mxu1 %v895_v0 }
  0xa1   :  { %576 = vmatpush3.bf16.msra.mxu0 %v652_v7 }
  0xa2   :  { %577 = vmatprep.subr.bf16.mxu0 %v895_v0 }
  0xa3   :  { %596 = vmatpush3.bf16.msra.mxu1 %v660_v12 }
  0xa4   :  { %597 = vmatprep.subr.bf16.mxu1 %v895_v0 }
  0xa5   :  { %578 = vmatpush3.bf16.msra.mxu0 %v653_v9 }
  0xa6   :  { %579 = vmatprep.subr.bf16.mxu0 %v895_v0 }
  0xa7   :  { %598 = vmatpush3.bf16.msra.mxu1 %v661_v16 }
  0xa8   :  { %599 = vmatprep.subr.bf16.mxu1 %v895_v0 }
  0xa9   :  { %580 = vmatpush3.bf16.msra.mxu0 %v654_v11 }
  0xaa   :  { %581 = vmatprep.subr.bf16.mxu0 %v895_v0 }
  0xab   :  { %600 = vmatpush3.bf16.msra.mxu1 %v662_v17 }
  0xac   :  { %601 = vmatprep.subr.bf16.mxu1 %v895_v0 }
  0xad   :  { %582 = vmatpush3.bf16.msra.mxu0 %v655_v13 }
  0xae   :  { %583 = vmatprep.subr.bf16.mxu0 %v895_v0 }
  0xaf   :  { %602 = vmatpush3.bf16.msra.mxu1 %v663_v18 }
  0xb0   :  { %603 = vmatprep.subr.bf16.mxu1 %v895_v0 }
  0xb1   :  { %584 = vmatpush3.bf16.msra.mxu0 %v656_v14 }
  0xb3   :  { %604 = vmatpush3.bf16.msra.mxu1 %v664_v19 }
  0xb4   :  { %586 = vmatmul.mubr.bf16.vlgmr.msra.gmra.mrb[0].mxu0 %v148_v15  ;;  %609 = vmatprep.subr.bf16.mxu1 %v895_v0 }
 0x115   :  { %v139_v21 = vpop.permute.xlu0 %138 }
 0x116   :  { %v147_v22 = vmul.f32 %v515_v20, %v139_v21 }
 0x187   :  { %v247_v23 = vpop.f32.mrb[0].mxu0 }
 0x188   :  { %v253_v25 = vadd.f32 %v247_v23, %v147_v22  ;;  %v587_v26 = vpop.f32.mrb[1].mxu0 }
 0x189   :  { %v250_v27 = vpop.f32.mrb[2].mxu0 }
 0x18a   :  { %v261_v28 = vadd.f32 %v524_v24, %v253_v25  ;;  %v588_v29 = vpop.f32.mrb[3].mxu0 }
 0x18c   :  { %673 = vtanh.f32 %v261_v28 }
 0x196   :  { %v674_v30 = vpop.eup %673 }
 0x197   :  { %v263_v32 = vpack.c.bf16 %v674_v30, %v674_v30 }
 0x199   :  { %606 = vmatmul.mubr.bf16.vlgmr.msra.gmra.mrb[0].mxu1 %v263_v32 }
 0x19a   :  { %610 = vmatpush3.bf16.msra.mxu1 %v665_v31  ;;  %625 = vmatprep.mubr.msk.bf16.mxu1 %vm896_vm0, %v895_v0 }
 0x19b   :  { %611 = vmatprep.subr.bf16.mxu1 %v895_v0 }
 0x19e   :  { %612 = vmatpush3.bf16.msra.mxu1 %v666_v33 }
 0x19f   :  { %613 = vmatprep.subr.bf16.mxu1 %v895_v0 }
 0x1a2   :  { %614 = vmatpush3.bf16.msra.mxu1 %v667_v34 }
 0x1a3   :  { %615 = vmatprep.subr.bf16.mxu1 %v895_v0 }
 0x1a6   :  { %616 = vmatpush3.bf16.msra.mxu1 %v668_v35 }
 0x1a7   :  { %617 = vmatprep.subr.bf16.mxu1 %v895_v0 }
 0x1aa   :  { %618 = vmatpush3.bf16.msra.mxu1 %v669_v36 }
 0x1ab   :  { %619 = vmatprep.subr.bf16.mxu1 %v895_v0 }
 0x1ae   :  { %620 = vmatpush3.bf16.msra.mxu1 %v670_v37 }
 0x1af   :  { %621 = vmatprep.subr.bf16.mxu1 %v895_v0 }
 0x1b2   :  { %622 = vmatpush3.bf16.msra.mxu1 %v671_v38 }
 0x1b3   :  { %623 = vmatprep.subr.bf16.mxu1 %v895_v0 }
 0x1b6   :  { %624 = vmatpush3.bf16.msra.mxu1 %v672_v39 }
 0x1b9   :  { %626 = vmatmul.mubr.bf16.vlgmr.msra.gmra.mrb[0].mxu1 %v381_v40 }
 0x28c   :  { %v481_v42 = vpop.f32.mrb[0].mxu1 }
 0x28d   :  { %v629_v43 = vadd.f32 %v525_v41, %v481_v42  ;;  %v627_v44 = vpop.f32.mrb[1].mxu1 }
 0x28e   :  { %v484_v45 = vpop.f32.mrb[2].mxu1 }
 0x28f   :  { %493 = vst [vmem:[#allocation17] sm:$0xff] %v629_v43  ;;  %v628_v46 = vpop.f32.mrb[3].mxu1 }
 0x290   :  { %862 = shalt.err (!%p859_p12)
}
 0x291   :  { %s863_s11 = scalar_lea.hbm %s1113_s8, 128 }
 0x292   :  { %p864_p13 = scmp.ne.s32.totalorder %s1113_s8, %s863_s11  ;;  %p867_p0 = scmp.lt.u32.totalorder %s863_s11, %s1113_s8 }
 0x294   :  { %p869_p1 = pnand %p867_p0, %p864_p13 }
 0x296   :  { %872 = shalt.err (!%p869_p1)
}
 0x297   :  { %503 = dma.vmem_to_hbm [thread:$0]  %s501_s1, 128, %s1113_s8, [#allocation5]  }
 0x298   :  { %883 = dma.done.wait [#allocation5], 128  }
 0x299   :  { %884 = vsyncadd [#allocation5], 4294967168 }
 0x29a   :  { %507 = vsyncpa [#allocation4], 1 }
 0x29b   :  { %508 = vsyncpa [#allocation7], 1 }
 0x29c   :  { %509 = vsyncpa [#allocation10], 1 }
 0x29d   :  { %510 = vsyncpa [#allocation13], 1 }
 0x29e   :  { %511 = vsyncpa [#allocation16], 1 }
 0x29f   :  { %512 = vsyncpa [#allocation5], 1 }

</bundles_post_ra>
